<compile_context>
chip_gen: v5e
topology: v5e:2x2
jax: 0.10.0
libtpu: 0.0.40
codegen_flags: <defaults>
</compile_context>

<pallas_src>
import functools

import jax
import jax.numpy as jnp
from jax import lax
from jax.experimental import pallas as pl
from jax.experimental.pallas import tpu as pltpu


# ----------------------------------------------------------------------------
# Fused per-episode-block kernel: inner SGD adaptation + query fwd/bwd + stats
# ----------------------------------------------------------------------------
def _episode_kernel(w_ref, s_ref, q_ref, out_ref, *, num_updates, inner_lr, d_pad):
    E, S, _ = s_ref.shape
    Q = q_ref.shape[1]
    y_lane = d_pad - 1            # label packed here by the wrapper
    # lane d_pad - 2 holds a constant 1.0 feature; w's same lane holds the bias.

    sx = s_ref[...]               # [E, S, Dpad]  features + bias-one + y, all in vregs
    qx = q_ref[...]               # [E, Q, Dpad]

    lane_s = lax.broadcasted_iota(jnp.int32, sx.shape, 2)
    lane_q = lax.broadcasted_iota(jnp.int32, qx.shape, 2)
    sy = jnp.sum(jnp.where(lane_s == y_lane, sx, 0.0), axis=-1, keepdims=True)  # [E,S,1]
    qy = jnp.sum(jnp.where(lane_q == y_lane, qx, 0.0), axis=-1, keepdims=True)  # [E,Q,1]

    lane_w = lax.broadcasted_iota(jnp.int32, (E, 1, d_pad), 2)
    w_valid = lane_w != y_lane    # keep the y-lane of w pinned at zero across updates

    inv_s = 1.0 / float(S)
    inv_q = 1.0 / float(Q)

    def fwd_bwd(x, y, w, inv_n):
        # VPU broadcast-multiply + XLU lane reduce instead of an N=1 MXU matmul.
        # z = x.w + b  (bias folded into the constant-1 lane of x / bias lane of w).
        z = jnp.sum(x * w, axis=-1, keepdims=True)                     # [E, n, 1]
        e = jnp.exp(-jnp.abs(z))                                       # EUP; shared by sigmoid & BCE
        r = pl.reciprocal(1.0 + e, approx=True)
        p = jnp.where(z >= 0, r, e * r)                                # stable sigmoid
        gz = (p - y) * inv_n                                           # dL/dz
        gw = jnp.sum(x * gz, axis=1, keepdims=True)                    # [E, 1, Dpad] sublane reduce
        gw = jnp.where(w_valid, gw, 0.0)                               # mask the y-lane
        loss = jnp.sum(jnp.maximum(z, 0.0) - z * y + jnp.log(1.0 + e),
                       axis=1, keepdims=True) * inv_n                  # [E, 1, 1]
        return loss, p, gw

    # --- theta_pi <- theta, then num_updates SGD steps on the support set (lr=0.001)
    w0 = jnp.broadcast_to(w_ref[...][None], (E, 1, d_pad))             # [E, 1, Dpad]

    def inner_step(_, w):
        _, _, gw = fwd_bwd(sx, sy, w, inv_s)
        return w - inner_lr * gw

    w = lax.fori_loop(0, num_updates, inner_step, w0, unroll=True)

    # --- query-set loss + first-order grads at the adapted parameters
    qloss, qp, gw = fwd_bwd(qx, qy, w, inv_q)
    pred = (qp > 0.5).astype(jnp.float32)
    acc = jnp.mean((pred == qy).astype(jnp.float32), axis=1, keepdims=True)  # [E,1,1]

    # Row 0: grad row (gb sits in lane d_pad-2).  Row 1: [loss, acc, 0, ...].
    stats = (jnp.where(lane_w == 0, qloss, 0.0)
             + jnp.where(lane_w == 1, acc, 0.0))                        # [E, 1, Dpad]
    out_ref[...] = jnp.concatenate([gw, stats], axis=1)                 # one dense vst


# ----------------------------------------------------------------------------
# Meta optimizer step (write_grads semantics: summed query grads + one Adam step)
# ----------------------------------------------------------------------------
def adam_step(theta, grads, lr, b1=0.9, b2=0.999, eps=1e-8):
    # TODO(synk): stateless t=1 Adam; the original keeps Adam moments across
    #             meta-iterations (optimizer state would live outside this fn).
    new_theta = []
    for p, g in zip(theta, grads):
        m = (1.0 - b1) * g
        v = (1.0 - b2) * g * g
        m_hat = m / (1.0 - b1)
        v_hat = v / (1.0 - b2)
        new_theta.append(p - lr * m_hat / (jnp.sqrt(v_hat) + eps))
    return tuple(new_theta)


# ----------------------------------------------------------------------------
# Wrapper-side feature construction (XLA fuses this into a few cheap ops).
# Lane layout of the slab: [0:D) features | zeros | Dpad-2: 1.0 (bias) | Dpad-1: y
# ----------------------------------------------------------------------------
def _build_feature_slab(atom, bond, mask, img, y, d_pad):
    f32 = jnp.float32
    MB, n = atom.shape[:2]
    atom = atom.astype(f32)
    bond = bond.astype(f32)
    mask = mask.astype(f32)
    img = img.reshape(MB, n, -1).astype(f32)
    y = y.astype(f32)

    masked = atom * mask[..., None]
    denom = jnp.sum(mask, axis=2, keepdims=True) + 1e-6
    atom_mean = jnp.sum(masked, axis=2) / denom          # [MB, n, Da]
    bond_mean = jnp.mean(bond, axis=2)                   # [MB, n, Db]
    feat = jnp.concatenate([atom_mean, bond_mean, img], axis=-1)  # [MB, n, D]
    D = feat.shape[-1]
    pad = d_pad - D - 2
    slab = jnp.concatenate(
        [feat,
         jnp.zeros((MB, n, pad), f32),
         jnp.ones((MB, n, 1), f32),                      # bias feature
         y[..., None]],                                  # label lane
        axis=-1)
    return slab, D


# ----------------------------------------------------------------------------
# MetaLearner.forward — one fused pallas_call over all episodes
# ----------------------------------------------------------------------------
def meta_forward(theta,
                 sup_atom, sup_bond, sup_mask, sup_img, sup_y,
                 qry_atom, qry_bond, qry_mask, qry_img, qry_y,
                 num_updates=5, inner_lr=1e-3, meta_lr=1e-3,
                 episodes_per_step=1):
    w, b = theta                                          # w: [D,1], b: [1,1]
    f32 = jnp.float32
    MB, S = sup_atom.shape[:2]
    Q = qry_atom.shape[1]
    Da = sup_atom.shape[3]
    Db = sup_bond.shape[3]
    Di = 1
    for d in sup_img.shape[2:]:
        Di *= d
    D = Da + Db + Di
    Dpad = max(128, ((D + 2 + 127) // 128) * 128)         # lane-aligned (+bias, +y lanes)

    sup_slab, _ = _build_feature_slab(sup_atom, sup_bond, sup_mask, sup_img, sup_y, Dpad)
    qry_slab, _ = _build_feature_slab(qry_atom, qry_bond, qry_mask, qry_img, qry_y, Dpad)

    w_row = jnp.zeros((1, Dpad), f32)
    w_row = w_row.at[0, :D].set(w[:, 0].astype(f32))
    w_row = w_row.at[0, Dpad - 2].set(jnp.asarray(b, f32).reshape(()))   # bias lane

    E = int(episodes_per_step)
    assert MB % E == 0, "episodes_per_step must divide meta_batchsz"
    grid = (MB // E,)

    kern = functools.partial(_episode_kernel,
                             num_updates=int(num_updates),
                             inner_lr=float(inner_lr),
                             d_pad=Dpad)

    out = pl.pallas_call(
        kern,
        out_shape=jax.ShapeDtypeStruct((MB, 2, Dpad), f32),
        grid_spec=pltpu.PrefetchScalarGridSpec(
            num_scalar_prefetch=0,
            grid=grid,
            in_specs=[
                pl.BlockSpec((1, Dpad), lambda i: (0, 0)),          # shared theta row
                pl.BlockSpec((E, S, Dpad), lambda i: (i, 0, 0)),    # support slab
                pl.BlockSpec((E, Q, Dpad), lambda i: (i, 0, 0)),    # query slab
            ],
            out_specs=pl.BlockSpec((E, 2, Dpad), lambda i: (i, 0, 0)),
        ),
        compiler_params=pltpu.CompilerParams(
            dimension_semantics=("parallel",)),           # episodes -> megacore on v7x
    )(w_row, sup_slab, qry_slab)

    grad_rows = out[:, 0, :]                              # [MB, Dpad]
    stats = out[:, 1, :]                                  # [MB, Dpad]
    losses = stats[:, 0]                                  # [MB]
    accs = stats[:, 1]                                    # [MB]
    # TODO(synk): precision / recall / mcc / roc_auc / f1 use sklearn on host numpy
    #             in the original; only accuracy is reproduced here.

    # write_grads(): sum per-episode query grads over the meta-batch, one Adam step.
    sum_gw = jnp.sum(grad_rows[:, :D], axis=0)[:, None]   # [D, 1]
    sum_gb = jnp.sum(grad_rows[:, Dpad - 2]).reshape(1, 1)
    new_theta = adam_step((w, b), (sum_gw, sum_gb), meta_lr)
    return losses, accs, new_theta


# ----------------------------------------------------------------------------
if __name__ == "__main__":
    key = jax.random.PRNGKey(0)
    meta_batchsz, setsz, querysz = 2, 8, 8
    n_atoms, d_atom = 16, 32
    n_bonds, d_bond = 16, 16
    C, H, W = 4, 4, 4
    d_img = C * H * W
    D = d_atom + d_bond + d_img
    num_updates = 5

    ks = jax.random.split(key, 12)
    f32 = jnp.float32
    sup_atom = jax.random.normal(ks[0], (meta_batchsz, setsz, n_atoms, d_atom), f32)
    sup_bond = jax.random.normal(ks[1], (meta_batchsz, setsz, n_bonds, d_bond), f32)
    sup_mask = (jax.random.uniform(ks[2], (meta_batchsz, setsz, n_atoms)) > 0.3).astype(f32)
    sup_img = jax.random.normal(ks[3], (meta_batchsz, setsz, C, H, W), f32)
    sup_y = (jax.random.uniform(ks[4], (meta_batchsz, setsz)) > 0.5).astype(f32)

    qry_atom = jax.random.normal(ks[5], (meta_batchsz, querysz, n_atoms, d_atom), f32)
    qry_bond = jax.random.normal(ks[6], (meta_batchsz, querysz, n_bonds, d_bond), f32)
    qry_mask = (jax.random.uniform(ks[7], (meta_batchsz, querysz, n_atoms)) > 0.3).astype(f32)
    qry_img = jax.random.normal(ks[8], (meta_batchsz, querysz, C, H, W), f32)
    qry_y = (jax.random.uniform(ks[9], (meta_batchsz, querysz)) > 0.5).astype(f32)

    # deterministic synthetic-net parameters (theta)
    w0 = jax.random.normal(ks[10], (D, 1), f32) * 0.1
    b0 = jnp.zeros((1, 1), f32)
    theta = (w0, b0)

    # episodes_per_step=1 keeps one episode per grid step (megacore-parallel on v7x);
    # on single-TC chips (v5e/v6e) set episodes_per_step=meta_batchsz to batch episodes.
    losses, accs, new_theta = meta_forward(
        theta,
        sup_atom, sup_bond, sup_mask, sup_img, sup_y,
        qry_atom, qry_bond, qry_mask, qry_img, qry_y,
        num_updates=num_updates, inner_lr=1e-3, meta_lr=1e-3,
        episodes_per_step=1)

    jax.block_until_ready((losses, accs, new_theta))
    print("KERNEL_OK")
</pallas_src>

<mosaic_0001>
module attributes {stable_mosaic.version = 11 : i64} {
  func.func @_episode_kernel(%arg0: i32, %arg1: memref<1x128xf32, #tpu.memory_space<vmem>>, %arg2: memref<1x8x128xf32, #tpu.memory_space<vmem>>, %arg3: memref<1x8x128xf32, #tpu.memory_space<vmem>>, %arg4: memref<1x2x128xf32, #tpu.memory_space<vmem>>) attributes {dimension_semantics = [#tpu.dimension_semantics<parallel>], iteration_bounds = array<i64: 2>, scalar_prefetch = 0 : i64, scratch_operands = 0 : i64, tpu.core_type = #tpu.core_type<tc>, window_params = [{pipeline_mode = #tpu.pipeline_mode<synchronous>, transform_indices = @transform_0, window_bounds = array<i64: 1, 128>}, {transform_indices = @transform_1, window_bounds = array<i64: 1, 8, 128>}, {transform_indices = @transform_2, window_bounds = array<i64: 1, 8, 128>}, {transform_indices = @transform_3, window_bounds = array<i64: 1, 2, 128>}]} {
    %c0 = arith.constant 0 : index
    %c0_0 = arith.constant 0 : index
    %c0_1 = arith.constant 0 : index
    %0 = vector.load %arg2[%c0, %c0_0, %c0_1] : memref<1x8x128xf32, #tpu.memory_space<vmem>>, vector<1x8x128xf32>
    %c0_2 = arith.constant 0 : index
    %c0_3 = arith.constant 0 : index
    %c0_4 = arith.constant 0 : index
    %1 = vector.load %arg3[%c0_2, %c0_3, %c0_4] : memref<1x8x128xf32, #tpu.memory_space<vmem>>, vector<1x8x128xf32>
    %2 = tpu.iota {dimensions = array<i32: 2>} : vector<1x8x128xi32>
    %3 = tpu.iota {dimensions = array<i32: 2>} : vector<1x8x128xi32>
    %c127_i32 = arith.constant 127 : i32
    %4 = vector.broadcast %c127_i32 : i32 to vector<1x8x128xi32>
    %5 = arith.cmpi eq, %2, %4 : vector<1x8x128xi32>
    %cst = arith.constant 0.000000e+00 : f32
    %6 = vector.broadcast %cst : f32 to vector<1x8x128xf32>
    %7 = arith.select %5, %0, %6 : vector<1x8x128xi1>, vector<1x8x128xf32>
    %cst_5 = arith.constant dense<0.000000e+00> : vector<1x8xf32>
    %8 = vector.multi_reduction <add>, %7, %cst_5 [2] : vector<1x8x128xf32> to vector<1x8xf32>
    %9 = vector.shape_cast %8 : vector<1x8xf32> to vector<1x8x1xf32>
    %c127_i32_6 = arith.constant 127 : i32
    %10 = vector.broadcast %c127_i32_6 : i32 to vector<1x8x128xi32>
    %11 = arith.cmpi eq, %3, %10 : vector<1x8x128xi32>
    %cst_7 = arith.constant 0.000000e+00 : f32
    %12 = vector.broadcast %cst_7 : f32 to vector<1x8x128xf32>
    %13 = arith.select %11, %1, %12 : vector<1x8x128xi1>, vector<1x8x128xf32>
    %cst_8 = arith.constant dense<0.000000e+00> : vector<1x8xf32>
    %14 = vector.multi_reduction <add>, %13, %cst_8 [2] : vector<1x8x128xf32> to vector<1x8xf32>
    %15 = vector.shape_cast %14 : vector<1x8xf32> to vector<1x8x1xf32>
    %16 = tpu.iota {dimensions = array<i32: 2>} : vector<1x1x128xi32>
    %c127_i32_9 = arith.constant 127 : i32
    %17 = vector.broadcast %c127_i32_9 : i32 to vector<1x1x128xi32>
    %18 = arith.cmpi ne, %16, %17 : vector<1x1x128xi32>
    %c0_10 = arith.constant 0 : index
    %c0_11 = arith.constant 0 : index
    %19 = vector.load %arg1[%c0_10, %c0_11] : memref<1x128xf32, #tpu.memory_space<vmem>>, vector<1x128xf32>
    %20 = vector.shape_cast %19 : vector<1x128xf32> to vector<1x1x128xf32>
    %c0_i32 = arith.constant 0 : i32
    %21 = vector.broadcast %20 : vector<1x1x128xf32> to vector<1x8x128xf32>
    %22 = arith.mulf %0, %21 : vector<1x8x128xf32>
    %cst_12 = arith.constant dense<0.000000e+00> : vector<1x8xf32>
    %23 = vector.multi_reduction <add>, %22, %cst_12 [2] : vector<1x8x128xf32> to vector<1x8xf32>
    %24 = vector.shape_cast %23 : vector<1x8xf32> to vector<1x8x1xf32>
    %25 = math.absf %24 : vector<1x8x1xf32>
    %cst_13 = arith.constant 0.000000e+00 : f32
    %26 = vector.broadcast %cst_13 : f32 to vector<1x8x1xf32>
    %27 = arith.subf %26, %25 : vector<1x8x1xf32>
    %28 = math.exp %27 : vector<1x8x1xf32>
    %cst_14 = arith.constant 1.000000e+00 : f32
    %29 = vector.broadcast %cst_14 : f32 to vector<1x8x1xf32>
    %30 = arith.addf %29, %28 : vector<1x8x1xf32>
    %31 = tpu.reciprocal %30 {approx = true} : vector<1x8x1xf32> -> vector<1x8x1xf32>
    %cst_15 = arith.constant 0.000000e+00 : f32
    %32 = vector.broadcast %cst_15 : f32 to vector<1x8x1xf32>
    %33 = arith.cmpf oge, %24, %32 : vector<1x8x1xf32>
    %34 = arith.mulf %28, %31 : vector<1x8x1xf32>
    %35 = arith.select %33, %31, %34 : vector<1x8x1xi1>, vector<1x8x1xf32>
    %36 = arith.subf %35, %9 : vector<1x8x1xf32>
    %cst_16 = arith.constant 1.250000e-01 : f32
    %37 = vector.broadcast %cst_16 : f32 to vector<1x8x1xf32>
    %38 = arith.mulf %36, %37 : vector<1x8x1xf32>
    %39 = vector.broadcast %38 : vector<1x8x1xf32> to vector<1x8x128xf32>
    %40 = arith.mulf %0, %39 : vector<1x8x128xf32>
    %cst_17 = arith.constant dense<0.000000e+00> : vector<1x128xf32>
    %41 = vector.multi_reduction <add>, %40, %cst_17 [1] : vector<1x8x128xf32> to vector<1x128xf32>
    %42 = vector.shape_cast %41 : vector<1x128xf32> to vector<1x1x128xf32>
    %cst_18 = arith.constant 0.000000e+00 : f32
    %43 = vector.broadcast %cst_18 : f32 to vector<1x1x128xf32>
    %44 = arith.select %18, %42, %43 : vector<1x1x128xi1>, vector<1x1x128xf32>
    %cst_19 = arith.constant 1.000000e-03 : f32
    %45 = vector.broadcast %cst_19 : f32 to vector<1x1x128xf32>
    %46 = arith.mulf %45, %44 : vector<1x1x128xf32>
    %47 = arith.subf %20, %46 : vector<1x1x128xf32>
    %c1_i32 = arith.constant 1 : i32
    %48 = vector.broadcast %47 : vector<1x1x128xf32> to vector<1x8x128xf32>
    %49 = arith.mulf %0, %48 : vector<1x8x128xf32>
    %cst_20 = arith.constant dense<0.000000e+00> : vector<1x8xf32>
    %50 = vector.multi_reduction <add>, %49, %cst_20 [2] : vector<1x8x128xf32> to vector<1x8xf32>
    %51 = vector.shape_cast %50 : vector<1x8xf32> to vector<1x8x1xf32>
    %52 = math.absf %51 : vector<1x8x1xf32>
    %cst_21 = arith.constant 0.000000e+00 : f32
    %53 = vector.broadcast %cst_21 : f32 to vector<1x8x1xf32>
    %54 = arith.subf %53, %52 : vector<1x8x1xf32>
    %55 = math.exp %54 : vector<1x8x1xf32>
    %cst_22 = arith.constant 1.000000e+00 : f32
    %56 = vector.broadcast %cst_22 : f32 to vector<1x8x1xf32>
    %57 = arith.addf %56, %55 : vector<1x8x1xf32>
    %58 = tpu.reciprocal %57 {approx = true} : vector<1x8x1xf32> -> vector<1x8x1xf32>
    %cst_23 = arith.constant 0.000000e+00 : f32
    %59 = vector.broadcast %cst_23 : f32 to vector<1x8x1xf32>
    %60 = arith.cmpf oge, %51, %59 : vector<1x8x1xf32>
    %61 = arith.mulf %55, %58 : vector<1x8x1xf32>
    %62 = arith.select %60, %58, %61 : vector<1x8x1xi1>, vector<1x8x1xf32>
    %63 = arith.subf %62, %9 : vector<1x8x1xf32>
    %cst_24 = arith.constant 1.250000e-01 : f32
    %64 = vector.broadcast %cst_24 : f32 to vector<1x8x1xf32>
    %65 = arith.mulf %63, %64 : vector<1x8x1xf32>
    %66 = vector.broadcast %65 : vector<1x8x1xf32> to vector<1x8x128xf32>
    %67 = arith.mulf %0, %66 : vector<1x8x128xf32>
    %cst_25 = arith.constant dense<0.000000e+00> : vector<1x128xf32>
    %68 = vector.multi_reduction <add>, %67, %cst_25 [1] : vector<1x8x128xf32> to vector<1x128xf32>
    %69 = vector.shape_cast %68 : vector<1x128xf32> to vector<1x1x128xf32>
    %cst_26 = arith.constant 0.000000e+00 : f32
    %70 = vector.broadcast %cst_26 : f32 to vector<1x1x128xf32>
    %71 = arith.select %18, %69, %70 : vector<1x1x128xi1>, vector<1x1x128xf32>
    %cst_27 = arith.constant 1.000000e-03 : f32
    %72 = vector.broadcast %cst_27 : f32 to vector<1x1x128xf32>
    %73 = arith.mulf %72, %71 : vector<1x1x128xf32>
    %74 = arith.subf %47, %73 : vector<1x1x128xf32>
    %c2_i32 = arith.constant 2 : i32
    %75 = vector.broadcast %74 : vector<1x1x128xf32> to vector<1x8x128xf32>
    %76 = arith.mulf %0, %75 : vector<1x8x128xf32>
    %cst_28 = arith.constant dense<0.000000e+00> : vector<1x8xf32>
    %77 = vector.multi_reduction <add>, %76, %cst_28 [2] : vector<1x8x128xf32> to vector<1x8xf32>
    %78 = vector.shape_cast %77 : vector<1x8xf32> to vector<1x8x1xf32>
    %79 = math.absf %78 : vector<1x8x1xf32>
    %cst_29 = arith.constant 0.000000e+00 : f32
    %80 = vector.broadcast %cst_29 : f32 to vector<1x8x1xf32>
    %81 = arith.subf %80, %79 : vector<1x8x1xf32>
    %82 = math.exp %81 : vector<1x8x1xf32>
    %cst_30 = arith.constant 1.000000e+00 : f32
    %83 = vector.broadcast %cst_30 : f32 to vector<1x8x1xf32>
    %84 = arith.addf %83, %82 : vector<1x8x1xf32>
    %85 = tpu.reciprocal %84 {approx = true} : vector<1x8x1xf32> -> vector<1x8x1xf32>
    %cst_31 = arith.constant 0.000000e+00 : f32
    %86 = vector.broadcast %cst_31 : f32 to vector<1x8x1xf32>
    %87 = arith.cmpf oge, %78, %86 : vector<1x8x1xf32>
    %88 = arith.mulf %82, %85 : vector<1x8x1xf32>
    %89 = arith.select %87, %85, %88 : vector<1x8x1xi1>, vector<1x8x1xf32>
    %90 = arith.subf %89, %9 : vector<1x8x1xf32>
    %cst_32 = arith.constant 1.250000e-01 : f32
    %91 = vector.broadcast %cst_32 : f32 to vector<1x8x1xf32>
    %92 = arith.mulf %90, %91 : vector<1x8x1xf32>
    %93 = vector.broadcast %92 : vector<1x8x1xf32> to vector<1x8x128xf32>
    %94 = arith.mulf %0, %93 : vector<1x8x128xf32>
    %cst_33 = arith.constant dense<0.000000e+00> : vector<1x128xf32>
    %95 = vector.multi_reduction <add>, %94, %cst_33 [1] : vector<1x8x128xf32> to vector<1x128xf32>
    %96 = vector.shape_cast %95 : vector<1x128xf32> to vector<1x1x128xf32>
    %cst_34 = arith.constant 0.000000e+00 : f32
    %97 = vector.broadcast %cst_34 : f32 to vector<1x1x128xf32>
    %98 = arith.select %18, %96, %97 : vector<1x1x128xi1>, vector<1x1x128xf32>
    %cst_35 = arith.constant 1.000000e-03 : f32
    %99 = vector.broadcast %cst_35 : f32 to vector<1x1x128xf32>
    %100 = arith.mulf %99, %98 : vector<1x1x128xf32>
    %101 = arith.subf %74, %100 : vector<1x1x128xf32>
    %c3_i32 = arith.constant 3 : i32
    %102 = vector.broadcast %101 : vector<1x1x128xf32> to vector<1x8x128xf32>
    %103 = arith.mulf %0, %102 : vector<1x8x128xf32>
    %cst_36 = arith.constant dense<0.000000e+00> : vector<1x8xf32>
    %104 = vector.multi_reduction <add>, %103, %cst_36 [2] : vector<1x8x128xf32> to vector<1x8xf32>
    %105 = vector.shape_cast %104 : vector<1x8xf32> to vector<1x8x1xf32>
    %106 = math.absf %105 : vector<1x8x1xf32>
    %cst_37 = arith.constant 0.000000e+00 : f32
    %107 = vector.broadcast %cst_37 : f32 to vector<1x8x1xf32>
    %108 = arith.subf %107, %106 : vector<1x8x1xf32>
    %109 = math.exp %108 : vector<1x8x1xf32>
    %cst_38 = arith.constant 1.000000e+00 : f32
    %110 = vector.broadcast %cst_38 : f32 to vector<1x8x1xf32>
    %111 = arith.addf %110, %109 : vector<1x8x1xf32>
    %112 = tpu.reciprocal %111 {approx = true} : vector<1x8x1xf32> -> vector<1x8x1xf32>
    %cst_39 = arith.constant 0.000000e+00 : f32
    %113 = vector.broadcast %cst_39 : f32 to vector<1x8x1xf32>
    %114 = arith.cmpf oge, %105, %113 : vector<1x8x1xf32>
    %115 = arith.mulf %109, %112 : vector<1x8x1xf32>
    %116 = arith.select %114, %112, %115 : vector<1x8x1xi1>, vector<1x8x1xf32>
    %117 = arith.subf %116, %9 : vector<1x8x1xf32>
    %cst_40 = arith.constant 1.250000e-01 : f32
    %118 = vector.broadcast %cst_40 : f32 to vector<1x8x1xf32>
    %119 = arith.mulf %117, %118 : vector<1x8x1xf32>
    %120 = vector.broadcast %119 : vector<1x8x1xf32> to vector<1x8x128xf32>
    %121 = arith.mulf %0, %120 : vector<1x8x128xf32>
    %cst_41 = arith.constant dense<0.000000e+00> : vector<1x128xf32>
    %122 = vector.multi_reduction <add>, %121, %cst_41 [1] : vector<1x8x128xf32> to vector<1x128xf32>
    %123 = vector.shape_cast %122 : vector<1x128xf32> to vector<1x1x128xf32>
    %cst_42 = arith.constant 0.000000e+00 : f32
    %124 = vector.broadcast %cst_42 : f32 to vector<1x1x128xf32>
    %125 = arith.select %18, %123, %124 : vector<1x1x128xi1>, vector<1x1x128xf32>
    %cst_43 = arith.constant 1.000000e-03 : f32
    %126 = vector.broadcast %cst_43 : f32 to vector<1x1x128xf32>
    %127 = arith.mulf %126, %125 : vector<1x1x128xf32>
    %128 = arith.subf %101, %127 : vector<1x1x128xf32>
    %c4_i32 = arith.constant 4 : i32
    %129 = vector.broadcast %128 : vector<1x1x128xf32> to vector<1x8x128xf32>
    %130 = arith.mulf %0, %129 : vector<1x8x128xf32>
    %cst_44 = arith.constant dense<0.000000e+00> : vector<1x8xf32>
    %131 = vector.multi_reduction <add>, %130, %cst_44 [2] : vector<1x8x128xf32> to vector<1x8xf32>
    %132 = vector.shape_cast %131 : vector<1x8xf32> to vector<1x8x1xf32>
    %133 = math.absf %132 : vector<1x8x1xf32>
    %cst_45 = arith.constant 0.000000e+00 : f32
    %134 = vector.broadcast %cst_45 : f32 to vector<1x8x1xf32>
    %135 = arith.subf %134, %133 : vector<1x8x1xf32>
    %136 = math.exp %135 : vector<1x8x1xf32>
    %cst_46 = arith.constant 1.000000e+00 : f32
    %137 = vector.broadcast %cst_46 : f32 to vector<1x8x1xf32>
    %138 = arith.addf %137, %136 : vector<1x8x1xf32>
    %139 = tpu.reciprocal %138 {approx = true} : vector<1x8x1xf32> -> vector<1x8x1xf32>
    %cst_47 = arith.constant 0.000000e+00 : f32
    %140 = vector.broadcast %cst_47 : f32 to vector<1x8x1xf32>
    %141 = arith.cmpf oge, %132, %140 : vector<1x8x1xf32>
    %142 = arith.mulf %136, %139 : vector<1x8x1xf32>
    %143 = arith.select %141, %139, %142 : vector<1x8x1xi1>, vector<1x8x1xf32>
    %144 = arith.subf %143, %9 : vector<1x8x1xf32>
    %cst_48 = arith.constant 1.250000e-01 : f32
    %145 = vector.broadcast %cst_48 : f32 to vector<1x8x1xf32>
    %146 = arith.mulf %144, %145 : vector<1x8x1xf32>
    %147 = vector.broadcast %146 : vector<1x8x1xf32> to vector<1x8x128xf32>
    %148 = arith.mulf %0, %147 : vector<1x8x128xf32>
    %cst_49 = arith.constant dense<0.000000e+00> : vector<1x128xf32>
    %149 = vector.multi_reduction <add>, %148, %cst_49 [1] : vector<1x8x128xf32> to vector<1x128xf32>
    %150 = vector.shape_cast %149 : vector<1x128xf32> to vector<1x1x128xf32>
    %cst_50 = arith.constant 0.000000e+00 : f32
    %151 = vector.broadcast %cst_50 : f32 to vector<1x1x128xf32>
    %152 = arith.select %18, %150, %151 : vector<1x1x128xi1>, vector<1x1x128xf32>
    %cst_51 = arith.constant 1.000000e-03 : f32
    %153 = vector.broadcast %cst_51 : f32 to vector<1x1x128xf32>
    %154 = arith.mulf %153, %152 : vector<1x1x128xf32>
    %155 = arith.subf %128, %154 : vector<1x1x128xf32>
    %156 = vector.broadcast %155 : vector<1x1x128xf32> to vector<1x8x128xf32>
    %157 = arith.mulf %1, %156 : vector<1x8x128xf32>
    %cst_52 = arith.constant dense<0.000000e+00> : vector<1x8xf32>
    %158 = vector.multi_reduction <add>, %157, %cst_52 [2] : vector<1x8x128xf32> to vector<1x8xf32>
    %159 = vector.shape_cast %158 : vector<1x8xf32> to vector<1x8x1xf32>
    %160 = math.absf %159 : vector<1x8x1xf32>
    %cst_53 = arith.constant 0.000000e+00 : f32
    %161 = vector.broadcast %cst_53 : f32 to vector<1x8x1xf32>
    %162 = arith.subf %161, %160 : vector<1x8x1xf32>
    %163 = math.exp %162 : vector<1x8x1xf32>
    %cst_54 = arith.constant 1.000000e+00 : f32
    %164 = vector.broadcast %cst_54 : f32 to vector<1x8x1xf32>
    %165 = arith.addf %164, %163 : vector<1x8x1xf32>
    %166 = tpu.reciprocal %165 {approx = true} : vector<1x8x1xf32> -> vector<1x8x1xf32>
    %cst_55 = arith.constant 0.000000e+00 : f32
    %167 = vector.broadcast %cst_55 : f32 to vector<1x8x1xf32>
    %168 = arith.cmpf oge, %159, %167 : vector<1x8x1xf32>
    %169 = arith.mulf %163, %166 : vector<1x8x1xf32>
    %170 = arith.select %168, %166, %169 : vector<1x8x1xi1>, vector<1x8x1xf32>
    %171 = arith.subf %170, %15 : vector<1x8x1xf32>
    %cst_56 = arith.constant 1.250000e-01 : f32
    %172 = vector.broadcast %cst_56 : f32 to vector<1x8x1xf32>
    %173 = arith.mulf %171, %172 : vector<1x8x1xf32>
    %174 = vector.broadcast %173 : vector<1x8x1xf32> to vector<1x8x128xf32>
    %175 = arith.mulf %1, %174 : vector<1x8x128xf32>
    %cst_57 = arith.constant dense<0.000000e+00> : vector<1x128xf32>
    %176 = vector.multi_reduction <add>, %175, %cst_57 [1] : vector<1x8x128xf32> to vector<1x128xf32>
    %177 = vector.shape_cast %176 : vector<1x128xf32> to vector<1x1x128xf32>
    %cst_58 = arith.constant 0.000000e+00 : f32
    %178 = vector.broadcast %cst_58 : f32 to vector<1x1x128xf32>
    %179 = arith.select %18, %177, %178 : vector<1x1x128xi1>, vector<1x1x128xf32>
    %cst_59 = arith.constant 0.000000e+00 : f32
    %180 = vector.broadcast %cst_59 : f32 to vector<1x8x1xf32>
    %181 = arith.maximumf %159, %180 : vector<1x8x1xf32>
    %182 = arith.mulf %159, %15 : vector<1x8x1xf32>
    %183 = arith.subf %181, %182 : vector<1x8x1xf32>
    %cst_60 = arith.constant 1.000000e+00 : f32
    %184 = vector.broadcast %cst_60 : f32 to vector<1x8x1xf32>
    %185 = arith.addf %184, %163 : vector<1x8x1xf32>
    %186 = math.log %185 : vector<1x8x1xf32>
    %187 = arith.addf %183, %186 : vector<1x8x1xf32>
    %cst_61 = arith.constant dense<0.000000e+00> : vector<1x1xf32>
    %188 = vector.multi_reduction <add>, %187, %cst_61 [1] : vector<1x8x1xf32> to vector<1x1xf32>
    %189 = vector.shape_cast %188 : vector<1x1xf32> to vector<1x1x1xf32>
    %cst_62 = arith.constant 1.250000e-01 : f32
    %190 = vector.broadcast %cst_62 : f32 to vector<1x1x1xf32>
    %191 = arith.mulf %189, %190 : vector<1x1x1xf32>
    %cst_63 = arith.constant 5.000000e-01 : f32
    %192 = vector.broadcast %cst_63 : f32 to vector<1x8x1xf32>
    %193 = arith.cmpf ogt, %170, %192 : vector<1x8x1xf32>
    %194 = arith.extui %193 : vector<1x8x1xi1> to vector<1x8x1xi32>
    %195 = arith.sitofp %194 : vector<1x8x1xi32> to vector<1x8x1xf32>
    %196 = arith.cmpf oeq, %195, %15 : vector<1x8x1xf32>
    %197 = arith.extui %196 : vector<1x8x1xi1> to vector<1x8x1xi32>
    %198 = arith.sitofp %197 : vector<1x8x1xi32> to vector<1x8x1xf32>
    %cst_64 = arith.constant dense<0.000000e+00> : vector<1x1xf32>
    %199 = vector.multi_reduction <add>, %198, %cst_64 [1] : vector<1x8x1xf32> to vector<1x1xf32>
    %200 = vector.shape_cast %199 : vector<1x1xf32> to vector<1x1x1xf32>
    %cst_65 = arith.constant 8.000000e+00 : f32
    %201 = vector.broadcast %cst_65 : f32 to vector<1x1x1xf32>
    %202 = arith.divf %200, %201 : vector<1x1x1xf32>
    %c0_i32_66 = arith.constant 0 : i32
    %203 = vector.broadcast %c0_i32_66 : i32 to vector<1x1x128xi32>
    %204 = arith.cmpi eq, %16, %203 : vector<1x1x128xi32>
    %cst_67 = arith.constant 0.000000e+00 : f32
    %205 = vector.shape_cast %191 : vector<1x1x1xf32> to vector<1x1x1xf32>
    %206 = vector.broadcast %205 : vector<1x1x1xf32> to vector<1x1x128xf32>
    %207 = vector.broadcast %cst_67 : f32 to vector<1x1x128xf32>
    %208 = arith.select %204, %206, %207 : vector<1x1x128xi1>, vector<1x1x128xf32>
    %c1_i32_68 = arith.constant 1 : i32
    %209 = vector.broadcast %c1_i32_68 : i32 to vector<1x1x128xi32>
    %210 = arith.cmpi eq, %16, %209 : vector<1x1x128xi32>
    %cst_69 = arith.constant 0.000000e+00 : f32
    %211 = vector.shape_cast %202 : vector<1x1x1xf32> to vector<1x1x1xf32>
    %212 = vector.broadcast %211 : vector<1x1x1xf32> to vector<1x1x128xf32>
    %213 = vector.broadcast %cst_69 : f32 to vector<1x1x128xf32>
    %214 = arith.select %210, %212, %213 : vector<1x1x128xi1>, vector<1x1x128xf32>
    %215 = arith.addf %208, %214 : vector<1x1x128xf32>
    %216 = tpu.concatenate %179, %215 in 1 : vector<1x1x128xf32>, vector<1x1x128xf32> -> vector<1x2x128xf32>
    %c0_70 = arith.constant 0 : index
    %c0_71 = arith.constant 0 : index
    %c0_72 = arith.constant 0 : index
    %217 = vector.load %arg4[%c0_70, %c0_71, %c0_72] : memref<1x2x128xf32, #tpu.memory_space<vmem>>, vector<1x2x128xf32>
    tpu.vector_store %arg4[%c0_70, %c0_71, %c0_72], %216 {strides = array<i32>} : memref<1x2x128xf32, #tpu.memory_space<vmem>>, vector<1x2x128xf32>,
    return
  }
  func.func @transform_0(%arg0: i32) -> (i32, i32) {
    %c0_i32 = arith.constant 0 : i32
    %c0_i32_0 = arith.constant 0 : i32
    %c0_i32_1 = arith.constant 0 : i32
    return %c0_i32, %c0_i32_0 : i32, i32
  }
  func.func @transform_1(%arg0: i32) -> (i32, i32, i32) {
    %c0_i32 = arith.constant 0 : i32
    %c0_i32_0 = arith.constant 0 : i32
    %c0_i32_1 = arith.constant 0 : i32
    return %arg0, %c0_i32, %c0_i32_0 : i32, i32, i32
  }
  func.func @transform_2(%arg0: i32) -> (i32, i32, i32) {
    %c0_i32 = arith.constant 0 : i32
    %c0_i32_0 = arith.constant 0 : i32
    %c0_i32_1 = arith.constant 0 : i32
    return %arg0, %c0_i32, %c0_i32_0 : i32, i32, i32
  }
  func.func @transform_3(%arg0: i32) -> (i32, i32, i32) {
    %c0_i32 = arith.constant 0 : i32
    %c0_i32_0 = arith.constant 0 : i32
    %c0_i32_1 = arith.constant 0 : i32
    return %arg0, %c0_i32, %c0_i32_0 : i32, i32, i32
  }
}

</mosaic_0001>

<bundles_post_ra>
// kernel: tpu_custom_call.1
= control target key start
LH: loop header
LB: loop body
LE: loop exit
PB: predicated region body
PF: predicated region fallthrough
CT: control target
= control target key end

     0   :  { %8 = vsyncpa [#allocation3], 0  ;;  %s1094_s0 = inlined_call_operand.hbm [shape: f32[1,128], index: 0, kind: input, shape index: {}]   ;;  %s1095_s1 = inlined_call_operand.hbm [shape: f32[2,8,128], index: 1, kind: input, shape index: {}]   ;;  %s1096_s2 = inlined_call_operand.hbm [shape: f32[2,8,128], index: 2, kind: input, shape index: {}]   ;;  %s1097_s3 = inlined_call_operand.hbm [shape: f32[2,2,128], index: 3, kind: output, shape index: {}]  }
   0x1   :  { %9 = vsyncpa [#allocation6], 0 }
   0x2   :  { %11 = vsyncpa [#allocation6 + $0x1], 0 }
   0x3   :  { %12 = vsyncpa [#allocation4], 0 }
   0x4   :  { %14 = vsyncpa [#allocation4 + $0x1], 0  ;;  %s868_s12 = smov 0   ;;  %s870_s13 = smov 0  }
   0x5   :  { %s872_s14 = smov 0   ;;  %s874_s15 = smov 0  }
   0x6 LB: > { %s889_s16 = sadd.s32 1, %s843_s15   ;;  %s48_s17 = sadd.s32 1, %s839_s14  ;;  %s843_s15 = sphi %s874_s15, %s1111_s15   ;;  %s839_s14 = sphi %s872_s14, %s1110_s14   ;;  %s835_s13 = sphi %s870_s13, %s1109_s13   ;;  %s831_s12 = sphi %s868_s12, %s1108_s12  }
   0x7   : > { %s45_s18 = ssub.s32 %s843_s15, %s889_s16  ;;  %p55_p0 = scmp.ne.s32.totalorder %s839_s14, %s835_s13 }
   0x8   : > { %p46_p1 = scmp.eq.s32.totalorder %s45_s18, 0  ;;  %p56_p2 = scmp.eq.s32.totalorder %s843_s15, 0 }
   0x9   : > { %p616_p4 = scmp.lt.s32.totalorder %s843_s15, 2  ;;  %s149_s20 = sand.u32 1, %s843_s15  }
   0xa   : > { %s900_s19 = scalar_select %p46_p1, %s839_s14, %s48_s17  }
   0xb   : > { %p57_p5 = por %p56_p2, %p55_p0  ;;  %s151_s21 = sand.u32 1, %s839_s14  }
   0xc   : > { %s907_s22 = sshll.u32 %s151_s21, 3  ;;  %s576_s23 = sshll.u32 %s843_s15, 3 }
   0xd   : > { %s157_s26 = scalar_lea.hbm %s1095_s1, %s576_s23  ;;  %s153_s28 = scalar_lea.vmem [#allocation5], %s907_s22 }
   0xe   : > { %s159_s27 = sshll.u32 %s157_s26, 4  ;;  %s161_s29 = sshll.u32 %s153_s28, 4  ;;  %s160_s27 = int_to_ptr.hbm [resolvable:$true] %s159_s27  ;;  %s162_s29 = int_to_ptr.vmem [resolvable:$true] %s161_s29 }
   0xf   : > { %p916_p6 = pnand %p616_p4, %p57_p5  ;;  %s923_s6 = scalar_lea.hbm %s1096_s2, %s576_s23 }
  0x10   : > { %s925_s7 = scalar_lea.sflag [#allocation6], %s149_s20  ;;  %s683_s8 = sshra.s32 %s160_s27, 4  ;;  %s684_s8 = int_to_ptr.hbm [resolvable:$true] %s683_s8 }
  0x11   : > { %s685_s9 = scalar_lea.hbm %s684_s8, 8  ;;  %p687_p8 = pneg %p916_p6 }
  0x12   : > { %p686_p7 = scmp.ne.s32.totalorder %s684_s8, %s685_s9  ;;  %s690_s17 = scalar_lea.hbm %s1095_s1, 16 }
  0x13   : > { %p691_p11 = scmp.lt.s32.totalorder %s684_s8, %s1095_s1  ;;  %p692_p12 = scmp.lt.s32.totalorder %s690_s17, %s685_s9 }
  0x14   : > { %p688_p9 = pnand %p687_p8, %p686_p7 }
  0x15   : > { %p693_p13 = por %p692_p12, %p691_p11 }
  0x16   : > { %p689_p10 = pneg %p688_p9 }
  0x18   : > { %p694_p1 = pnand %p693_p13, %p689_p10 }
  0x1a   : > { %697 = shalt.err (!%p694_p1)
}
  0x1b   : > { %607 = dma.hbm_to_vmem [thread:$0]  (!%p916_p6), %s160_s27, 128, %s162_s29, %s925_s7  }
  0x1c   : > { %s942_s20 = sadd.s32 4294967295, %s843_s15   ;;  %s571_s23 = sadd.s32 4294967294, %s843_s15  }
  0x1d   : > { %p61_p2 = scmp.ne.s32.totalorder %s835_s13, %s831_s12  ;;  %p1098_p4 = scmp.eq.s32.totalorder %s942_s20, 0 }
  0x1e   : > { %p111_p5 = scmp.eq.s32.totalorder %s942_s20, 1  ;;  %p117_p7 = scmp.eq.s32.totalorder %s571_s23, 1 }
  0x1f   : > { %p951_p9 = por %p1098_p4, %p61_p2  ;;  %p572_p10 = scmp.ge.s32.totalorder %s843_s15, 1 }
  0x20   : > { %p959_p11 = por %p111_p5, %p55_p0  ;;  %p963_p12 = por %p117_p7, %p61_p2 }
  0x21   : > { %p124_p13 = scmp.lt.s32.totalorder %s843_s15, 3  ;;  %s136_s29 = sshll.u32 %s1094_s0, 4  ;;  %s137_s29 = int_to_ptr.hbm [resolvable:$true] %s136_s29 }
  0x22   : > { %s845_s5 = smov [#allocation2]   ;;  %s178_s9 = sshll.u32 %s923_s6, 4  ;;  %s179_s9 = int_to_ptr.hbm [resolvable:$true] %s178_s9 }
  0x23   : > { %p971_p1 = pnand %p572_p10, %p124_p13  ;;  %s138_s8 = sshll.u32 %s845_s5, 4  ;;  %s139_s8 = int_to_ptr.vmem [resolvable:$true] %s138_s8 }
  0x24   : > { %s172_s10 = scalar_lea.vmem [#allocation7], %s907_s22  ;;  %s713_s18 = sshra.s32 %s179_s9, 4  ;;  %s714_s18 = int_to_ptr.hbm [resolvable:$true] %s713_s18 }
  0x25   : > { %p600_p0 = pneg %p971_p1  ;;  %s180_s11 = sshll.u32 %s172_s10, 4  ;;  %s181_s11 = int_to_ptr.vmem [resolvable:$true] %s180_s11 }
  0x26   : > { %s715_s21 = scalar_lea.hbm %s714_s18, 8  ;;  %s720_s27 = scalar_lea.hbm %s1096_s2, 16 }
  0x27   : > { %p981_p2 = pnand %p600_p0, %p1098_p4  ;;  %p716_p5 = scmp.ne.s32.totalorder %s714_s18, %s715_s21 }
  0x28   : > { %p721_p13 = scmp.lt.s32.totalorder %s714_s18, %s1096_s2  ;;  %p722_p0 = scmp.lt.s32.totalorder %s720_s27, %s715_s21 }
  0x29   : > { %p718_p7 = pnand %p716_p5, %p687_p8 }
  0x2a   : > { %p723_p3 = por %p722_p0, %p721_p13 }
  0x2b   : > { %p719_p10 = pneg %p718_p7 }
  0x2d   : > { %p724_p4 = pnand %p723_p3, %p719_p10 }
  0x2f   : > { %727 = shalt.err (!%p724_p4)
}
  0x30   : > { %610 = dma.hbm_to_vmem [thread:$0]  (!%p916_p6), %s179_s9, 128, %s181_s11, %s925_s7  }
  0x31   : > { %603 = dma.hbm_to_vmem [thread:$0]  (!%p981_p2), %s137_s29, 16, %s139_s8, [#allocation3]  }
  0x32   : > { %189 = sbr.rel (%p971_p1) target bundleno = 1069 (0x42d), region = 32  ;;  %p1105_p8 = scmp.eq.s32.totalorder (!%p971_p1), %s942_s20, 0 }
  0x37   : > { %818 = dma.done.wait (%p1105_p8), [#allocation3], 16   ;;  %p1106_p5 = pmov %p1105_p8 }
  0x38   : > { %s196_s5 = sand.u32 1, %s942_s20   ;;  %s1007_s10 = sand.u32 1, %s835_s13  }
  0x39   : > { %820 = vsyncadd (%p1106_p5), [#allocation3], 4294967280  ;;  %s581_s30 = sshll.u32 %s1007_s10, 3  ;;  %s197_s7 = scalar_lea.sflag [#allocation6], %s196_s5 }
  0x3a   : > { %s200_s29 = scalar_lea.vmem [#allocation5], %s581_s30 }
  0x3b   : > { %822 = dma.done.wait (%p951_p9), %s197_s7, 256  }
  0x3c   : > { %824 = vsyncadd (%p951_p9), %s197_s7, 4294967040  ;;  %v241_v0 = vlaneseq  ;;  %v1016_v1 = vld [vmem:[%s200_s29] sm:$0xff]  ;;  %v654_v2 = vld [vmem:[#allocation2] ss:$0 sm:$0xff]  ;;  %s210_s24 = scalar_lea.vmem [#allocation7], %s581_s30  ;;  %s583_s4 = sshll.u32 %s1007_s10, 1 }
  0x3d   : > { %v255_v3 = vmul.f32 %v654_v2, %v1016_v1  ;;  %v251_v25 = vld [vmem:[#allocation2] sm:$0x1]  ;;  %s587_s8 = sshll.u32 %s942_s20, 1  ;;  %s238_s18 = scalar_lea.vmem [#allocation8], %s583_s4  ;;  %vm450_vm13 = vcmask 1040384  }
  0x3e   : > { %v1019_v4 = vand.u32 127, %v241_v0  ;;  %s464_s17 = scalar_lea.hbm %s1097_s3, %s587_s8  ;;  %s466_s20 = sshll.u32 %s238_s18, 4  ;;  %s467_s20 = int_to_ptr.vmem [resolvable:$true] %s466_s20 }
  0x3f   : > { %256 = vadd.xlane.f32.xlu0 %v255_v3  ;;  %s468_s21 = sshll.u32 %s464_s17, 4  ;;  %s454_s6 = scalar_lea.sflag [#allocation4], %s1007_s10  ;;  %s469_s21 = int_to_ptr.hbm [resolvable:$true] %s468_s21 }
  0x40   : > { %vm243_vm0 = vcmp.eq.s32.totalorder %v1019_v4, 127  ;;  %vm250_vm2 = vcmp.ne.s32.totalorder %v1019_v4, 127  ;;  %vm447_vm11 = vcmp.eq.s32.totalorder %v1019_v4, 1  ;;  %vm445_vm12 = vcmp.eq.s32.totalorder %v1019_v4, 0  ;;  %s787_s23 = sshra.s32 %s469_s21, 4  ;;  %s793_s5 = scalar_lea.hbm %s1097_s3, 4  ;;  %s788_s23 = int_to_ptr.hbm [resolvable:$true] %s787_s23 }
  0x41   : > { %v244_v5 = vsel %vm243_vm0, %v1016_v1, 0.0  ;;  %s789_s27 = scalar_lea.hbm %s788_s23, 2  ;;  %p794_p9 = scmp.lt.s32.totalorder %s788_s23, %s1097_s3 }
  0x42   : > { %p790_p3 = scmp.ne.s32.totalorder %s788_s23, %s789_s27  ;;  %p795_p1 = scmp.lt.s32.totalorder %s793_s5, %s789_s27 }
  0x44   : > { %p791_p6 = pnand %p790_p3, %p959_p11  ;;  %p796_p2 = por %p795_p1, %p794_p9 }
  0x46   : > { %p792_p4 = pneg %p791_p6 }
  0x47   : > { %245 = vadd.xlane.f32.xlu0 %v244_v5 }
  0x48   : > { %p797_p7 = pnand %p796_p2, %p792_p4 }
  0xb2   : > { %v257_v6 = vpop.xlane.xlu0 %256 }
  0xb3   : > { %v258_v7 = vand.u32 2147483647, %v257_v6  ;;  %vm264_vm1 = vcmp.ge.f32.partialorder %v257_v6, 0.0 }
  0xb5   : > { %v259_v8 = vsub.f32 0.0, %v258_v7 }
  0xb7   : > { %v260_v9 = vmul.f32 1.442695, %v259_v8 }
  0xb9   : > { %655 = vpow2.f32 %v260_v9 }
  0xba   : > { %v1025_v14 = vpop.xlane.xlu0 %245 }
  0xbf   : > { %v656_v10 = vpop.eup %655 }
  0xc0   : > { %v262_v11 = vadd.f32 1.0, %v656_v10 }
  0xc2   : > { %657 = vrcp.f32 %v262_v11 }
  0xc8   : > { %v658_v12 = vpop.eup %657 }
  0xc9   : > { %v265_v13 = vmul.f32 %v658_v12, %v656_v10 }
  0xcb   : > { %v266_v15 = vsel %vm264_vm1, %v658_v12, %v265_v13 }
  0xcc   : > { %v267_v16 = vsub.f32 %v266_v15, %v1025_v14 }
  0xce   : > { %v268_v17 = vmul.f32 0.125, %v267_v16 }
  0xd0   : > { %v269_v18 = vmul.f32 %v268_v17, %v1016_v1 }
  0xd2   : > { %v270_v19 = vrot.slane %v269_v18, 4 }
  0xd4   : > { %v271_v20 = vadd.f32 %v270_v19, %v269_v18 }
  0xd6   : > { %v272_v21 = vrot.slane %v271_v20, 2 }
  0xd8   : > { %v273_v22 = vadd.f32 %v272_v21, %v271_v20 }
  0xda   : > { %v274_v23 = vrot.slane %v273_v22, 1 }
  0xdc   : > { %v275_v24 = vadd.f32 %v274_v23, %v273_v22 }
  0xde   : > { %v276_v26 = vsel %vm250_vm2, %v275_v24, 0.0 }
  0xdf   : > { %v277_v27 = vmul.f32 0.001, %v276_v26 }
  0xe1   : > { %v278_v28 = vsub.f32 %v251_v25, %v277_v27 }
  0xe3   : > { %v280_v29 = vperm.slane %v278_v28, 0 }
  0xe5   : > { %v282_v30 = vmul.f32 %v280_v29, %v1016_v1 }
  0xe7   : > { %283 = vadd.xlane.f32.xlu1 %v282_v30 }
 0x15a   : > { %v284_v31 = vpop.xlane.xlu1 %283 }
 0x15b   : > { %v285_v32 = vand.u32 2147483647, %v284_v31  ;;  %vm291_vm3 = vcmp.ge.f32.partialorder %v284_v31, 0.0 }
 0x15d   : > { %v286_v33 = vsub.f32 0.0, %v285_v32 }
 0x15f   : > { %v287_v34 = vmul.f32 1.442695, %v286_v33 }
 0x161   : > { %659 = vpow2.f32 %v287_v34 }
 0x167   : > { %v660_v35 = vpop.eup %659 }
 0x168   : > { %v289_v36 = vadd.f32 1.0, %v660_v35 }
 0x16a   : > { %661 = vrcp.f32 %v289_v36 }
 0x170   : > { %v662_v37 = vpop.eup %661 }
 0x171   : > { %v292_v38 = vmul.f32 %v662_v37, %v660_v35 }
 0x173   : > { %v293_v39 = vsel %vm291_vm3, %v662_v37, %v292_v38 }
 0x174   : > { %v294_v40 = vsub.f32 %v293_v39, %v1025_v14 }
 0x176   : > { %v295_v41 = vmul.f32 0.125, %v294_v40 }
 0x178   : > { %v296_v42 = vmul.f32 %v295_v41, %v1016_v1 }
 0x17a   : > { %v297_v43 = vrot.slane %v296_v42, 4 }
 0x17c   : > { %v298_v44 = vadd.f32 %v297_v43, %v296_v42  ;;  %v240_v42 = vld [vmem:[%s210_s24] sm:$0xff] }
 0x17e   : > { %v299_v45 = vrot.slane %v298_v44, 2 }
 0x180   : > { %v300_v46 = vadd.f32 %v299_v45, %v298_v44  ;;  %v247_v44 = vsel %vm243_vm0, %v240_v42, 0.0 }
 0x182   : > { %v301_v47 = vrot.slane %v300_v46, 1 }
 0x184   : > { %v302_v48 = vadd.f32 %v301_v47, %v300_v46 }
 0x186   : > { %v303_v49 = vsel %vm250_vm2, %v302_v48, 0.0 }
 0x187   : > { %v304_v50 = vmul.f32 0.001, %v303_v49 }
 0x189   : > { %v305_v51 = vsub.f32 %v278_v28, %v304_v50 }
 0x18b   : > { %v307_v52 = vperm.slane %v305_v51, 0 }
 0x18d   : > { %v309_v53 = vmul.f32 %v307_v52, %v1016_v1 }
 0x18f   : > { %310 = vadd.xlane.f32.xlu1 %v309_v53 }
 0x197   : > { %248 = vadd.xlane.f32.xlu1 %v247_v44 }
 0x202   : > { %v311_v54 = vpop.xlane.xlu1 %310 }
 0x203   : > { %v312_v55 = vand.u32 2147483647, %v311_v54  ;;  %vm318_vm4 = vcmp.ge.f32.partialorder %v311_v54, 0.0 }
 0x205   : > { %v313_v56 = vsub.f32 0.0, %v312_v55 }
 0x207   : > { %v314_v57 = vmul.f32 1.442695, %v313_v56 }
 0x209   : > { %663 = vpow2.f32 %v314_v57 }
 0x20f   : > { %v664_v58 = vpop.eup %663 }
 0x210   : > { %v316_v59 = vadd.f32 1.0, %v664_v58 }
 0x212   : > { %665 = vrcp.f32 %v316_v59 }
 0x218   : > { %v666_v60 = vpop.eup %665 }
 0x219   : > { %v319_v61 = vmul.f32 %v666_v60, %v664_v58 }
 0x21b   : > { %v320_v62 = vsel %vm318_vm4, %v666_v60, %v319_v61 }
 0x21c   : > { %v321_v63 = vsub.f32 %v320_v62, %v1025_v14 }
 0x21e   : > { %v322_v0 = vmul.f32 0.125, %v321_v63 }
 0x220   : > { %v323_v2 = vmul.f32 %v322_v0, %v1016_v1 }
 0x222   : > { %v324_v3 = vrot.slane %v323_v2, 4 }
 0x224   : > { %v325_v5 = vadd.f32 %v324_v3, %v323_v2 }
 0x226   : > { %v326_v6 = vrot.slane %v325_v5, 2 }
 0x228   : > { %v327_v7 = vadd.f32 %v326_v6, %v325_v5  ;;  %v846_v6 = vmov 8.0  }
 0x22a   : > { %v328_v8 = vrot.slane %v327_v7, 1 }
 0x22c   : > { %v329_v9 = vadd.f32 %v328_v8, %v327_v7  ;;  %v249_v7 = vpop.xlane.xlu1 %248 }
 0x22e   : > { %v330_v10 = vsel %vm250_vm2, %v329_v9, 0.0 }
 0x22f   : > { %v331_v11 = vmul.f32 0.001, %v330_v10 }
 0x231   : > { %v332_v12 = vsub.f32 %v305_v51, %v331_v11 }
 0x233   : > { %v334_v13 = vperm.slane %v332_v12, 0 }
 0x235   : > { %v336_v15 = vmul.f32 %v334_v13, %v1016_v1 }
 0x237   : > { %337 = vadd.xlane.f32.xlu2 %v336_v15 }
 0x2aa   : > { %v338_v16 = vpop.xlane.xlu2 %337 }
 0x2ab   : > { %v339_v17 = vand.u32 2147483647, %v338_v16  ;;  %vm345_vm5 = vcmp.ge.f32.partialorder %v338_v16, 0.0 }
 0x2ad   : > { %v340_v18 = vsub.f32 0.0, %v339_v17 }
 0x2af   : > { %v341_v19 = vmul.f32 1.442695, %v340_v18 }
 0x2b1   : > { %667 = vpow2.f32 %v341_v19 }
 0x2b7   : > { %v668_v20 = vpop.eup %667 }
 0x2b8   : > { %v343_v21 = vadd.f32 1.0, %v668_v20 }
 0x2ba   : > { %669 = vrcp.f32 %v343_v21  ;;  %v847_v21 = vmov 0.0  }
 0x2c0   : > { %v670_v22 = vpop.eup %669 }
 0x2c1   : > { %v346_v23 = vmul.f32 %v670_v22, %v668_v20 }
 0x2c3   : > { %v347_v24 = vsel %vm345_vm5, %v670_v22, %v346_v23 }
 0x2c4   : > { %v348_v25 = vsub.f32 %v347_v24, %v1025_v14 }
 0x2c6   : > { %v349_v26 = vmul.f32 0.125, %v348_v25 }
 0x2c8   : > { %v350_v27 = vmul.f32 %v349_v26, %v1016_v1 }
 0x2ca   : > { %v351_v28 = vrot.slane %v350_v27, 4 }
 0x2cc   : > { %v352_v29 = vadd.f32 %v351_v28, %v350_v27 }
 0x2ce   : > { %v353_v30 = vrot.slane %v352_v29, 2 }
 0x2d0   : > { %v354_v31 = vadd.f32 %v353_v30, %v352_v29 }
 0x2d2   : > { %v355_v32 = vrot.slane %v354_v31, 1 }
 0x2d4   : > { %v356_v33 = vadd.f32 %v355_v32, %v354_v31 }
 0x2d6   : > { %v357_v34 = vsel %vm250_vm2, %v356_v33, 0.0 }
 0x2d7   : > { %v358_v35 = vmul.f32 0.001, %v357_v34 }
 0x2d9   : > { %v359_v36 = vsub.f32 %v332_v12, %v358_v35 }
 0x2db   : > { %v361_v37 = vperm.slane %v359_v36, 0 }
 0x2dd   : > { %v363_v38 = vmul.f32 %v361_v37, %v1016_v1 }
 0x2df   : > { %364 = vadd.xlane.f32.xlu2 %v363_v38 }
 0x352   : > { %v365_v39 = vpop.xlane.xlu2 %364 }
 0x353   : > { %v366_v40 = vand.u32 2147483647, %v365_v39  ;;  %vm372_vm6 = vcmp.ge.f32.partialorder %v365_v39, 0.0 }
 0x355   : > { %v367_v41 = vsub.f32 0.0, %v366_v40 }
 0x357   : > { %v368_v43 = vmul.f32 1.442695, %v367_v41 }
 0x359   : > { %671 = vpow2.f32 %v368_v43 }
 0x35f   : > { %v672_v45 = vpop.eup %671 }
 0x360   : > { %v370_v46 = vadd.f32 1.0, %v672_v45 }
 0x362   : > { %673 = vrcp.f32 %v370_v46 }
 0x368   : > { %v674_v47 = vpop.eup %673 }
 0x369   : > { %v373_v48 = vmul.f32 %v674_v47, %v672_v45 }
 0x36b   : > { %v374_v49 = vsel %vm372_vm6, %v674_v47, %v373_v48 }
 0x36c   : > { %v375_v50 = vsub.f32 %v374_v49, %v1025_v14 }
 0x36e   : > { %v376_v51 = vmul.f32 0.125, %v375_v50 }
 0x370   : > { %v377_v52 = vmul.f32 %v376_v51, %v1016_v1 }
 0x372   : > { %v378_v53 = vrot.slane %v377_v52, 4 }
 0x374   : > { %v379_v54 = vadd.f32 %v378_v53, %v377_v52 }
 0x376   : > { %v380_v55 = vrot.slane %v379_v54, 2 }
 0x378   : > { %v381_v56 = vadd.f32 %v380_v55, %v379_v54 }
 0x37a   : > { %v382_v57 = vrot.slane %v381_v56, 1 }
 0x37c   : > { %v383_v58 = vadd.f32 %v382_v57, %v381_v56 }
 0x37e   : > { %v384_v59 = vsel %vm250_vm2, %v383_v58, 0.0 }
 0x37f   : > { %v385_v60 = vmul.f32 0.001, %v384_v59 }
 0x381   : > { %v386_v61 = vsub.f32 %v359_v36, %v385_v60 }
 0x383   : > { %v388_v62 = vperm.slane %v386_v61, 0 }
 0x385   : > { %v390_v63 = vmul.f32 %v388_v62, %v240_v42 }
 0x387   : > { %391 = vadd.xlane.f32.xlu0 %v390_v63 }
 0x3fa   : > { %v392_v0 = vpop.xlane.xlu0 %391 }
 0x3fb   : > { %v393_v2 = vand.u32 2147483647, %v392_v0  ;;  %v412_v9 = vmax.f32 %v392_v0, 0.0  ;;  %v413_v10 = vmul.f32 %v392_v0, %v249_v7  ;;  %vm399_vm7 = vcmp.ge.f32.partialorder %v392_v0, 0.0 }
 0x3fd   : > { %v394_v14 = vsub.f32 0.0, %v393_v2  ;;  %v414_v17 = vsub.f32 %v412_v9, %v413_v10 }
 0x3ff   : > { %v395_v3 = vmul.f32 1.442695, %v394_v14 }
 0x401   : > { %675 = vpow2.f32 %v395_v3 }
 0x402   : > { %677 = vrcp.f32 %v846_v6 }
 0x407   : > { %v676_v1 = vpop.eup %675 }
 0x408   : > { %v397_v5 = vadd.f32 1.0, %v676_v1  ;;  %v678_v8 = vpop.eup %677 }
 0x409   : > { %v438_v15 = vmul.f32 8.0, %v678_v8  ;;  %vm442_vm10 = vweird.f32 %v678_v8 }
 0x40a   : > { %679 = vrcp.f32 %v397_v5 }
 0x40b   : > { %681 = vlog2.f32 %v397_v5  ;;  %v439_v23 = vsub.f32 1.0, %v438_v15 }
 0x40d   : > { %v440_v30 = vmul.f32 %v678_v8, %v439_v23 }
 0x40f   : > { %v441_v37 = vadd.f32 %v678_v8, %v440_v30 }
 0x410   : > { %v680_v11 = vpop.eup %679 }
 0x411   : > { %v682_v12 = vpop.eup %681  ;;  %v400_v13 = vmul.f32 %v680_v11, %v676_v1  ;;  %v443_v44 = vsel %vm442_vm10, %v678_v8, %v441_v37 }
 0x412   : > { %v416_v16 = vmul.f32 0.6931472, %v682_v12 }
 0x413   : > { %v401_v18 = vsel %vm399_vm7, %v680_v11, %v400_v13 }
 0x414   : > { %vm425_vm8 = vcmp.gt.f32.partialorder %v401_v18, 0.5  ;;  %v402_v19 = vsub.f32 %v401_v18, %v249_v7  ;;  %v417_v20 = vadd.f32 %v416_v16, %v414_v17 }
 0x415   : > { %v584_v22 = vsel %vm425_vm8, 1.0, %v847_v21 }
 0x416   : > { %v403_v24 = vmul.f32 0.125, %v402_v19  ;;  %v418_v25 = vrot.slane %v417_v20, 4  ;;  %vm428_vm9 = vcmp.eq.f32.partialorder %v584_v22, %v249_v7 }
 0x417   : > { %v585_v26 = vsel %vm428_vm9, 1.0, %v847_v21 }
 0x418   : > { %v404_v27 = vmul.f32 %v403_v24, %v240_v42  ;;  %v419_v28 = vadd.f32 %v418_v25, %v417_v20  ;;  %v431_v29 = vrot.slane %v585_v26, 4 }
 0x41a   : > { %v405_v31 = vrot.slane %v404_v27, 4  ;;  %v420_v32 = vrot.slane %v419_v28, 2  ;;  %v432_v33 = vadd.f32 %v585_v26, %v431_v29 }
 0x41c   : > { %v406_v34 = vadd.f32 %v405_v31, %v404_v27  ;;  %v421_v35 = vadd.f32 %v420_v32, %v419_v28  ;;  %v433_v36 = vrot.slane %v432_v33, 2 }
 0x41e   : > { %v407_v38 = vrot.slane %v406_v34, 2  ;;  %v422_v39 = vrot.slane %v421_v35, 1  ;;  %v434_v40 = vadd.f32 %v433_v36, %v432_v33 }
 0x420   : > { %v408_v41 = vadd.f32 %v407_v38, %v406_v34  ;;  %v423_v43 = vadd.f32 %v422_v39, %v421_v35  ;;  %v435_v42 = vrot.slane %v434_v40, 1 }
 0x422   : > { %v409_v45 = vrot.slane %v408_v41, 1  ;;  %v424_v46 = vmul.f32 0.125, %v423_v43  ;;  %v436_v47 = vadd.f32 %v435_v42, %v434_v40 }
 0x424   : > { %v410_v48 = vadd.f32 %v409_v45, %v408_v41  ;;  %v444_v49 = vmul.f32 %v443_v44, %v436_v47  ;;  %v446_v51 = vsel %vm445_vm12, %v424_v46, 0.0 }
 0x426   : > { %v448_v50 = vsel %vm447_vm11, %v444_v49, 0.0  ;;  %v411_v53 = vsel %vm250_vm2, %v410_v48, 0.0 }
 0x427   : > { %v449_v52 = vadd.f32 %v448_v50, %v446_v51 }
 0x429   : > { %v451_v54 = vsel %vm450_vm13, %v411_v53, %v449_v52 }
 0x42a   : > { %452 = vst [vmem:[%s238_s18] sm:$0x3] %v451_v54 }
 0x42b   : > { %800 = shalt.err (!%p797_p7)
}
 0x42c   : > { %598 = dma.vmem_to_hbm [thread:$0]  (%p959_p11), %s467_s20, 32, %s469_s21, %s454_s6  }
 0x42d PF: > { %s480_s10 = sand.u32 1, %s831_s12   ;;  %p1107_p10 = scmp.ge.s32.totalorder %s843_s15, 2 }
 0x42e   : > { %s481_s29 = scalar_lea.sflag [#allocation4], %s480_s10 }
 0x42f   : > { %p612_p13 = pnand %p1107_p10, %p963_p12 }
 0x431   : > { %p613_p0 = pneg %p612_p13 }
 0x433   : > { %826 = dma.done.wait (%p613_p0), %s481_s29, 32  }
 0x434   : > { %828 = vsyncadd (%p613_p0), %s481_s29, 4294967264  ;;  %p17_p8 = scmp.ge.s32.totalorder %s889_s16, 4   ;;  %s1108_s12 = smov %s835_s13 }
 0x435   : > { %s1109_s13 = smov %s839_s14  ;;  %s1110_s14 = smov %s900_s19 }
 0x436   : > { %s1111_s15 = smov %s889_s16  ;;  %19 = sbr.rel (!%p17_p8) target bundleno = 6 (0x6), region = 93 }
 0x43b   :  { %487 = vsyncpa [#allocation3], 1 }
 0x43c   :  { %489 = vsyncpa [#allocation3 + $0x1], 1 }
 0x43d   :  { %490 = vsyncpa [#allocation6], 1 }
 0x43e   :  { %492 = vsyncpa [#allocation6 + $0x1], 1 }
 0x43f   :  { %493 = vsyncpa [#allocation4], 1 }
 0x440   :  { %495 = vsyncpa [#allocation4 + $0x1], 1 }

</bundles_post_ra>
